<compile_context>
chip_gen: v6e
topology: v6e:2x2x1
jax: 0.10.0
libtpu: 0.0.40
codegen_flags: <defaults>
</compile_context>

<pallas_src>
import jax
import jax.numpy as jnp
from jax.experimental import pallas as pl
from jax.experimental.pallas import tpu as pltpu

HIDDEN = 128
LANE = 128        # TPU lane width (last-dim tile)
SUBLANE = 8       # TPU sublane width (second-to-last-dim tile) for f32
MAX_TILE = 256    # batch tile: fills the 256x256 MXU on v6e/v7x, 2x128 passes on v5e


def _round_up(n, m):
    return ((n + m - 1) // m) * m


def dqn_kernel(x_ref, w1_ref, b1_ref, w2_ref, b2_ref, w3_ref, b3_ref, o_ref):
    # x_ref: (tb, n_obs); all weights/biases fully resident in VMEM (broadcast across grid).
    x = x_ref[...]
    h1 = jnp.dot(x, w1_ref[...], preferred_element_type=jnp.float32) + b1_ref[...]
    h1 = jnp.maximum(h1, 0.0)
    h2 = jnp.dot(h1, w2_ref[...], preferred_element_type=jnp.float32) + b2_ref[...]
    h2 = jnp.maximum(h2, 0.0)
    out = jnp.dot(h2, w3_ref[...], preferred_element_type=jnp.float32) + b3_ref[...]
    o_ref[...] = out.astype(o_ref.dtype)


@jax.jit
def dqn_forward(x, params):
    """x: (B, n_obs) float32. params: w1/b1/w2/b2/w3/b3 with w as (in,out), b as (1,out)."""
    B, n_obs = x.shape
    n_actions = params["w3"].shape[1]

    # --- lane-dense output: pad the action dim up to a multiple of 128 (zeros) ---------------
    n_out_pad = _round_up(max(n_actions, LANE), LANE)
    w3, b3 = params["w3"], params["b3"]
    if n_out_pad != n_actions:
        w3 = jnp.pad(w3, ((0, 0), (0, n_out_pad - n_actions)))
        b3 = jnp.pad(b3, ((0, 0), (0, n_out_pad - n_actions)))

    # --- batch tiling: one step for small batches, 256-row MXU-filling tiles otherwise -------
    if B <= MAX_TILE:
        tb = _round_up(B, SUBLANE)      # whole (padded) batch in a single grid step
    else:
        tb = MAX_TILE
    B_pad = _round_up(B, tb)
    if B_pad != B:
        x = jnp.pad(x, ((0, B_pad - B), (0, 0)))   # harmless zero rows, sliced off below

    grid = (B_pad // tb,)
    full = lambda shape: pl.BlockSpec(shape, lambda i: (0, 0))   # resident / broadcast operand

    out = pl.pallas_call(
        dqn_kernel,
        out_shape=jax.ShapeDtypeStruct((B_pad, n_out_pad), jnp.float32),
        grid_spec=pltpu.PrefetchScalarGridSpec(
            num_scalar_prefetch=0,
            grid=grid,
            in_specs=[
                pl.BlockSpec((tb, n_obs), lambda i: (i, 0)),   # x tile over batch
                full((n_obs, HIDDEN)),                         # w1
                full((1, HIDDEN)),                             # b1
                full((HIDDEN, HIDDEN)),                        # w2
                full((1, HIDDEN)),                             # b2
                full((HIDDEN, n_out_pad)),                     # w3 (lane-padded)
                full((1, n_out_pad)),                          # b3 (lane-padded)
            ],
            out_specs=pl.BlockSpec((tb, n_out_pad), lambda i: (i, 0)),
        ),
        compiler_params=pltpu.CompilerParams(
            dimension_semantics=("parallel",)),   # batch steps shard across v7x TensorCores
    )(x, params["w1"], params["b1"], params["w2"], params["b2"], w3, b3)

    return out[:B, :n_actions]


def init_params(key, n_observations, n_actions):
    """Deterministic init mimicking PyTorch nn.Linear default U[-1/sqrt(fan_in), 1/sqrt(fan_in)]."""
    def linear(k, fan_in, fan_out):
        kw, kb = jax.random.split(k)
        bound = 1.0 / jnp.sqrt(fan_in)
        w = jax.random.uniform(kw, (fan_in, fan_out), jnp.float32, -bound, bound)
        b = jax.random.uniform(kb, (1, fan_out), jnp.float32, -bound, bound)
        return w, b

    k1, k2, k3 = jax.random.split(key, 3)
    w1, b1 = linear(k1, n_observations, HIDDEN)
    w2, b2 = linear(k2, HIDDEN, HIDDEN)
    w3, b3 = linear(k3, HIDDEN, n_actions)
    return {"w1": w1, "b1": b1, "w2": w2, "b2": b2, "w3": w3, "b3": b3}


def dqn_reference(x, p):
    h1 = jnp.maximum(x @ p["w1"] + p["b1"], 0.0)
    h2 = jnp.maximum(h1 @ p["w2"] + p["b2"], 0.0)
    return h2 @ p["w3"] + p["b3"]


if __name__ == "__main__":
    key = jax.random.PRNGKey(0)
    n_observations, n_actions = 4, 2   # CartPole-style DQN
    kx, kp = jax.random.split(key)
    params = init_params(kp, n_observations, n_actions)

    # small batch: single-grid-step path
    x_small = jax.random.normal(kx, (8, n_observations), dtype=jnp.float32)
    out_small = jax.block_until_ready(dqn_forward(x_small, params))
    ref_small = dqn_reference(x_small, params)
    assert out_small.shape == (8, n_actions)
    assert jnp.allclose(out_small, ref_small, atol=1e-5, rtol=1e-5), "mismatch (small batch)"

    # larger (ragged) batch: exercises the 256-row tiled / padded path
    x_big = jax.random.normal(kx, (500, n_observations), dtype=jnp.float32)
    out_big = jax.block_until_ready(dqn_forward(x_big, params))
    ref_big = dqn_reference(x_big, params)
    assert out_big.shape == (500, n_actions)
    assert jnp.allclose(out_big, ref_big, atol=1e-5, rtol=1e-5), "mismatch (tiled batch)"

    print("KERNEL_OK")
</pallas_src>

<mosaic_0001>
module attributes {stable_mosaic.version = 11 : i64} {
  func.func @dqn_kernel(%arg0: i32, %arg1: memref<8x4xf32, #tpu.memory_space<vmem>>, %arg2: memref<4x128xf32, #tpu.memory_space<vmem>>, %arg3: memref<1x128xf32, #tpu.memory_space<vmem>>, %arg4: memref<128x128xf32, #tpu.memory_space<vmem>>, %arg5: memref<1x128xf32, #tpu.memory_space<vmem>>, %arg6: memref<128x128xf32, #tpu.memory_space<vmem>>, %arg7: memref<1x128xf32, #tpu.memory_space<vmem>>, %arg8: memref<8x128xf32, #tpu.memory_space<vmem>>) attributes {dimension_semantics = [#tpu.dimension_semantics<parallel>], iteration_bounds = array<i64: 1>, scalar_prefetch = 0 : i64, scratch_operands = 0 : i64, tpu.core_type = #tpu.core_type<tc>, window_params = [{transform_indices = @transform_0, window_bounds = array<i64: 8, 4>}, {pipeline_mode = #tpu.pipeline_mode<synchronous>, transform_indices = @transform_1, window_bounds = array<i64: 4, 128>}, {pipeline_mode = #tpu.pipeline_mode<synchronous>, transform_indices = @transform_2, window_bounds = array<i64: 1, 128>}, {pipeline_mode = #tpu.pipeline_mode<synchronous>, transform_indices = @transform_3, window_bounds = array<i64: 128, 128>}, {pipeline_mode = #tpu.pipeline_mode<synchronous>, transform_indices = @transform_4, window_bounds = array<i64: 1, 128>}, {pipeline_mode = #tpu.pipeline_mode<synchronous>, transform_indices = @transform_5, window_bounds = array<i64: 128, 128>}, {pipeline_mode = #tpu.pipeline_mode<synchronous>, transform_indices = @transform_6, window_bounds = array<i64: 1, 128>}, {transform_indices = @transform_7, window_bounds = array<i64: 8, 128>}]} {
    %c0 = arith.constant 0 : index
    %c0_0 = arith.constant 0 : index
    %0 = vector.load %arg1[%c0, %c0_0] : memref<8x4xf32, #tpu.memory_space<vmem>>, vector<8x4xf32>
    %c0_1 = arith.constant 0 : index
    %c0_2 = arith.constant 0 : index
    %1 = vector.load %arg2[%c0_1, %c0_2] : memref<4x128xf32, #tpu.memory_space<vmem>>, vector<4x128xf32>
    %cst = arith.constant dense<0.000000e+00> : vector<8x128xf32>
    %2 = tpu.matmul %0, %1, %cst {dimension_numbers = #tpu.dot_dimension_numbers<[1], [0], [0], [1], [0, 0, 1, 1], [], []>} : vector<8x4xf32>, vector<4x128xf32>, vector<8x128xf32> -> vector<8x128xf32>
    %c0_3 = arith.constant 0 : index
    %c0_4 = arith.constant 0 : index
    %3 = vector.load %arg3[%c0_3, %c0_4] : memref<1x128xf32, #tpu.memory_space<vmem>>, vector<1x128xf32>
    %4 = vector.broadcast %3 : vector<1x128xf32> to vector<8x128xf32>
    %5 = arith.addf %2, %4 : vector<8x128xf32>
    %cst_5 = arith.constant 0.000000e+00 : f32
    %6 = vector.broadcast %cst_5 : f32 to vector<8x128xf32>
    %7 = arith.maximumf %5, %6 : vector<8x128xf32>
    %c0_6 = arith.constant 0 : index
    %c0_7 = arith.constant 0 : index
    %8 = vector.load %arg4[%c0_6, %c0_7] : memref<128x128xf32, #tpu.memory_space<vmem>>, vector<128x128xf32>
    %cst_8 = arith.constant dense<0.000000e+00> : vector<8x128xf32>
    %9 = tpu.matmul %7, %8, %cst_8 {dimension_numbers = #tpu.dot_dimension_numbers<[1], [0], [0], [1], [0, 0, 1, 1], [], []>} : vector<8x128xf32>, vector<128x128xf32>, vector<8x128xf32> -> vector<8x128xf32>
    %c0_9 = arith.constant 0 : index
    %c0_10 = arith.constant 0 : index
    %10 = vector.load %arg5[%c0_9, %c0_10] : memref<1x128xf32, #tpu.memory_space<vmem>>, vector<1x128xf32>
    %11 = vector.broadcast %10 : vector<1x128xf32> to vector<8x128xf32>
    %12 = arith.addf %9, %11 : vector<8x128xf32>
    %cst_11 = arith.constant 0.000000e+00 : f32
    %13 = vector.broadcast %cst_11 : f32 to vector<8x128xf32>
    %14 = arith.maximumf %12, %13 : vector<8x128xf32>
    %c0_12 = arith.constant 0 : index
    %c0_13 = arith.constant 0 : index
    %15 = vector.load %arg6[%c0_12, %c0_13] : memref<128x128xf32, #tpu.memory_space<vmem>>, vector<128x128xf32>
    %cst_14 = arith.constant dense<0.000000e+00> : vector<8x128xf32>
    %16 = tpu.matmul %14, %15, %cst_14 {dimension_numbers = #tpu.dot_dimension_numbers<[1], [0], [0], [1], [0, 0, 1, 1], [], []>} : vector<8x128xf32>, vector<128x128xf32>, vector<8x128xf32> -> vector<8x128xf32>
    %c0_15 = arith.constant 0 : index
    %c0_16 = arith.constant 0 : index
    %17 = vector.load %arg7[%c0_15, %c0_16] : memref<1x128xf32, #tpu.memory_space<vmem>>, vector<1x128xf32>
    %18 = vector.broadcast %17 : vector<1x128xf32> to vector<8x128xf32>
    %19 = arith.addf %16, %18 : vector<8x128xf32>
    %c0_17 = arith.constant 0 : index
    %c0_18 = arith.constant 0 : index
    %20 = vector.load %arg8[%c0_17, %c0_18] : memref<8x128xf32, #tpu.memory_space<vmem>>, vector<8x128xf32>
    tpu.vector_store %arg8[%c0_17, %c0_18], %19 {strides = array<i32>} : memref<8x128xf32, #tpu.memory_space<vmem>>, vector<8x128xf32>,
    return
  }
  func.func @transform_0(%arg0: i32) -> (i32, i32) {
    %c0_i32 = arith.constant 0 : i32
    %c0_i32_0 = arith.constant 0 : i32
    return %arg0, %c0_i32 : i32, i32
  }
  func.func @transform_1(%arg0: i32) -> (i32, i32) {
    %c0_i32 = arith.constant 0 : i32
    %c0_i32_0 = arith.constant 0 : i32
    %c0_i32_1 = arith.constant 0 : i32
    return %c0_i32, %c0_i32_0 : i32, i32
  }
  func.func @transform_2(%arg0: i32) -> (i32, i32) {
    %c0_i32 = arith.constant 0 : i32
    %c0_i32_0 = arith.constant 0 : i32
    %c0_i32_1 = arith.constant 0 : i32
    return %c0_i32, %c0_i32_0 : i32, i32
  }
  func.func @transform_3(%arg0: i32) -> (i32, i32) {
    %c0_i32 = arith.constant 0 : i32
    %c0_i32_0 = arith.constant 0 : i32
    %c0_i32_1 = arith.constant 0 : i32
    return %c0_i32, %c0_i32_0 : i32, i32
  }
  func.func @transform_4(%arg0: i32) -> (i32, i32) {
    %c0_i32 = arith.constant 0 : i32
    %c0_i32_0 = arith.constant 0 : i32
    %c0_i32_1 = arith.constant 0 : i32
    return %c0_i32, %c0_i32_0 : i32, i32
  }
  func.func @transform_5(%arg0: i32) -> (i32, i32) {
    %c0_i32 = arith.constant 0 : i32
    %c0_i32_0 = arith.constant 0 : i32
    %c0_i32_1 = arith.constant 0 : i32
    return %c0_i32, %c0_i32_0 : i32, i32
  }
  func.func @transform_6(%arg0: i32) -> (i32, i32) {
    %c0_i32 = arith.constant 0 : i32
    %c0_i32_0 = arith.constant 0 : i32
    %c0_i32_1 = arith.constant 0 : i32
    return %c0_i32, %c0_i32_0 : i32, i32
  }
  func.func @transform_7(%arg0: i32) -> (i32, i32) {
    %c0_i32 = arith.constant 0 : i32
    %c0_i32_0 = arith.constant 0 : i32
    return %arg0, %c0_i32 : i32, i32
  }
}

</mosaic_0001>

<bundles_post_ra>
// kernel: dqn_forward.1
= control target key start
LH: loop header
LB: loop body
LE: loop exit
PB: predicated region body
PF: predicated region fallthrough
CT: control target
= control target key end

     0   :  { %vm39_vm0 = vcmask 1043456   ;;  %vm35_vm1 = vcmask 31744   ;;  %v424_v0 = vmov 0.0   ;;  %vm425_vm2 = vmmov 0   ;;  %s619_s1 = inlined_call_operand.vmem [shape: f32[4,128], index: 1, kind: input, shape index: {}]   ;;  %s620_s0 = inlined_call_operand.vmem [shape: f32[8,4], index: 0, kind: input, shape index: {}]   ;;  %s621_s3 = inlined_call_operand.vmem [shape: f32[128,128], index: 3, kind: input, shape index: {}]   ;;  %s622_s5 = inlined_call_operand.vmem [shape: f32[128,128], index: 5, kind: input, shape index: {}]   ;;  %s623_s2 = inlined_call_operand.vmem [shape: f32[1,128], index: 2, kind: input, shape index: {}]   ;;  %s624_s4 = inlined_call_operand.vmem [shape: f32[1,128], index: 4, kind: input, shape index: {}]   ;;  %s625_s6 = inlined_call_operand.vmem [shape: f32[1,128], index: 6, kind: input, shape index: {}]   ;;  %s626_s7 = inlined_call_operand.vmem [shape: f32[8,128], index: 7, kind: output, shape index: {}]  }
   0x1   :  { %347 = vmatprep.subr.mxu0 %v424_v0  ;;  %v27_v1 = vld [vmem:[%s619_s1] sm:$0xf]  ;;  %349 = vmatprep.mubr.msk.f32.mxu0 %vm425_vm2, %v424_v0  ;;  %v129_v3 = vld [vmem:[%s621_s3 + $0x78] sm:$0xff]  ;;  %v128_v4 = vld [vmem:[%s621_s3 + $0x70] sm:$0xff] }
   0x2   :  { %v26_v2 = vld [vmem:[%s620_s0] sm:$0xff]  ;;  %348 = vmatpush3.msk.msra.mxu0 %vm39_vm0, %v27_v1  ;;  %352 = vmatprep.subr.mxu1 %v424_v0  ;;  %v127_v5 = vld [vmem:[%s621_s3 + $0x68] sm:$0xff]  ;;  %v125_v7 = vld [vmem:[%s621_s3 + $0x58] sm:$0xff] }
   0x3   :  { %350 = vmatmul.mubr.msk.f32.vlgmr.msra.gmra.mxu0 %vm35_vm1, %v26_v2  ;;  %353 = vmatpush3.msra.mxu1 %v129_v3  ;;  %v126_v6 = vld [vmem:[%s621_s3 + $0x60] sm:$0xff]  ;;  %v124_v8 = vld [vmem:[%s621_s3 + $0x50] sm:$0xff]  ;;  %v123_v9 = vld [vmem:[%s621_s3 + $0x48] sm:$0xff] }
   0x4   :  { %354 = vmatprep.subr.mxu1 %v424_v0  ;;  %384 = vmatprep.mubr.msk.f32.mxu1 %vm425_vm2, %v424_v0  ;;  %v122_v10 = vld [vmem:[%s621_s3 + $0x40] sm:$0xff]  ;;  %v121_v11 = vld [vmem:[%s621_s3 + $0x38] sm:$0xff]  ;;  %v120_v12 = vld [vmem:[%s621_s3 + $0x30] sm:$0xff] }
   0x5   :  { %355 = vmatpush3.msra.mxu1 %v128_v4  ;;  %387 = vmatprep.subr.mxu0 %v424_v0  ;;  %v119_v13 = vld [vmem:[%s621_s3 + $0x28] sm:$0xff]  ;;  %v118_v14 = vld [vmem:[%s621_s3 + $0x20] sm:$0xff]  ;;  %v117_v15 = vld [vmem:[%s621_s3 + $0x18] sm:$0xff] }
   0x6   :  { %356 = vmatprep.subr.mxu1 %v424_v0  ;;  %419 = vmatprep.mubr.msk.f32.mxu0 %vm425_vm2, %v424_v0  ;;  %v116_v16 = vld [vmem:[%s621_s3 + $0x10] sm:$0xff]  ;;  %v115_v17 = vld [vmem:[%s621_s3 + $0x8] sm:$0xff]  ;;  %v114_v18 = vld [vmem:[%s621_s3] sm:$0xff] }
   0x7   :  { %357 = vmatpush3.msra.mxu1 %v127_v5  ;;  %v223_v19 = vld [vmem:[%s622_s5 + $0x78] sm:$0xff]  ;;  %v222_v20 = vld [vmem:[%s622_s5 + $0x70] sm:$0xff]  ;;  %v221_v21 = vld [vmem:[%s622_s5 + $0x68] sm:$0xff] }
   0x8   :  { %358 = vmatprep.subr.mxu1 %v424_v0  ;;  %388 = vmatpush3.msra.mxu0 %v223_v19  ;;  %v220_v22 = vld [vmem:[%s622_s5 + $0x60] sm:$0xff]  ;;  %v219_v23 = vld [vmem:[%s622_s5 + $0x58] sm:$0xff]  ;;  %v218_v24 = vld [vmem:[%s622_s5 + $0x50] sm:$0xff] }
   0x9   :  { %359 = vmatpush3.msra.mxu1 %v126_v6  ;;  %389 = vmatprep.subr.mxu0 %v424_v0  ;;  %v217_v25 = vld [vmem:[%s622_s5 + $0x48] sm:$0xff]  ;;  %v216_v26 = vld [vmem:[%s622_s5 + $0x40] sm:$0xff]  ;;  %v215_v27 = vld [vmem:[%s622_s5 + $0x38] sm:$0xff] }
   0xa   :  { %360 = vmatprep.subr.mxu1 %v424_v0  ;;  %390 = vmatpush3.msra.mxu0 %v222_v20  ;;  %v214_v28 = vld [vmem:[%s622_s5 + $0x30] sm:$0xff]  ;;  %v213_v29 = vld [vmem:[%s622_s5 + $0x28] sm:$0xff]  ;;  %v212_v30 = vld [vmem:[%s622_s5 + $0x20] sm:$0xff] }
   0xb   :  { %361 = vmatpush3.msra.mxu1 %v125_v7  ;;  %391 = vmatprep.subr.mxu0 %v424_v0  ;;  %v211_v31 = vld [vmem:[%s622_s5 + $0x18] sm:$0xff]  ;;  %v306_v32 = vld [vmem:[%s623_s2] ss:$0 sm:$0xff]  ;;  %v210_v37 = vld [vmem:[%s622_s5 + $0x10] sm:$0xff] }
   0xc   :  { %362 = vmatprep.subr.mxu1 %v424_v0  ;;  %392 = vmatpush3.msra.mxu0 %v221_v21  ;;  %v209_v38 = vld [vmem:[%s622_s5 + $0x8] sm:$0xff]  ;;  %v208_v39 = vld [vmem:[%s622_s5] sm:$0xff] }
   0xd   :  { %363 = vmatpush3.msra.mxu1 %v124_v8  ;;  %393 = vmatprep.subr.mxu0 %v424_v0  ;;  %v309_v40 = vld [vmem:[%s624_s4] ss:$0 sm:$0xff] }
   0xe   :  { %364 = vmatprep.subr.mxu1 %v424_v0  ;;  %394 = vmatpush3.msra.mxu0 %v220_v22  ;;  %v310_v45 = vld [vmem:[%s625_s6] ss:$0 sm:$0xff] }
   0xf   :  { %365 = vmatpush3.msra.mxu1 %v123_v9  ;;  %395 = vmatprep.subr.mxu0 %v424_v0 }
  0x10   :  { %366 = vmatprep.subr.mxu1 %v424_v0  ;;  %396 = vmatpush3.msra.mxu0 %v219_v23 }
  0x11   :  { %367 = vmatpush3.msra.mxu1 %v122_v10  ;;  %397 = vmatprep.subr.mxu0 %v424_v0 }
  0x12   :  { %368 = vmatprep.subr.mxu1 %v424_v0  ;;  %398 = vmatpush3.msra.mxu0 %v218_v24 }
  0x13   :  { %369 = vmatpush3.msra.mxu1 %v121_v11  ;;  %399 = vmatprep.subr.mxu0 %v424_v0 }
  0x14   :  { %370 = vmatprep.subr.mxu1 %v424_v0  ;;  %400 = vmatpush3.msra.mxu0 %v217_v25 }
  0x15   :  { %371 = vmatpush3.msra.mxu1 %v120_v12  ;;  %401 = vmatprep.subr.mxu0 %v424_v0 }
  0x16   :  { %372 = vmatprep.subr.mxu1 %v424_v0  ;;  %402 = vmatpush3.msra.mxu0 %v216_v26 }
  0x17   :  { %373 = vmatpush3.msra.mxu1 %v119_v13  ;;  %403 = vmatprep.subr.mxu0 %v424_v0 }
  0x18   :  { %374 = vmatprep.subr.mxu1 %v424_v0  ;;  %404 = vmatpush3.msra.mxu0 %v215_v27 }
  0x19   :  { %375 = vmatpush3.msra.mxu1 %v118_v14  ;;  %405 = vmatprep.subr.mxu0 %v424_v0 }
  0x1a   :  { %376 = vmatprep.subr.mxu1 %v424_v0  ;;  %406 = vmatpush3.msra.mxu0 %v214_v28 }
  0x1b   :  { %377 = vmatpush3.msra.mxu1 %v117_v15  ;;  %407 = vmatprep.subr.mxu0 %v424_v0 }
  0x1c   :  { %378 = vmatprep.subr.mxu1 %v424_v0  ;;  %408 = vmatpush3.msra.mxu0 %v213_v29 }
  0x1d   :  { %379 = vmatpush3.msra.mxu1 %v116_v16  ;;  %409 = vmatprep.subr.mxu0 %v424_v0 }
  0x1e   :  { %380 = vmatprep.subr.mxu1 %v424_v0  ;;  %410 = vmatpush3.msra.mxu0 %v212_v30 }
  0x1f   :  { %381 = vmatpush3.msra.mxu1 %v115_v17  ;;  %411 = vmatprep.subr.mxu0 %v424_v0 }
  0x20   :  { %382 = vmatprep.subr.mxu1 %v424_v0  ;;  %412 = vmatpush3.msra.mxu0 %v211_v31 }
  0x21   :  { %383 = vmatpush3.msra.mxu1 %v114_v18  ;;  %413 = vmatprep.subr.mxu0 %v424_v0 }
  0x22   :  { %414 = vmatpush3.msra.mxu0 %v210_v37 }
  0x23   :  { %415 = vmatprep.subr.mxu0 %v424_v0 }
  0x24   :  { %416 = vmatpush3.msra.mxu0 %v209_v38 }
  0x25   :  { %417 = vmatprep.subr.mxu0 %v424_v0 }
  0x26   :  { %418 = vmatpush3.msra.mxu0 %v208_v39 }
  0xc3   :  { %v109_v33 = vpop.f32.mrf.mxu0 }
  0xc4   :  { %v110_v34 = vadd.f32 %v306_v32, %v109_v33 }
  0xc5   :  { %v351_v35 = vpop.f32.mrf.mxu0 }
  0xc6   :  { %v113_v36 = vmax.f32 %v110_v34, 0.0 }
  0xc8   :  { %385 = vmatmul.mubr.f32.vlgmr.msra.gmra.mxu1 %v113_v36 }
 0x188   :  { %v203_v41 = vpop.f32.mrf.mxu1 }
 0x189   :  { %v204_v42 = vadd.f32 %v309_v40, %v203_v41 }
 0x18a   :  { %v386_v43 = vpop.f32.mrf.mxu1 }
 0x18b   :  { %v207_v44 = vmax.f32 %v204_v42, 0.0 }
 0x18d   :  { %420 = vmatmul.mubr.f32.vlgmr.msra.gmra.mxu0 %v207_v44 }
 0x24d   :  { %v297_v46 = vpop.f32.mrf.mxu0 }
 0x24e   :  { %v298_v47 = vadd.f32 %v310_v45, %v297_v46 }
 0x24f   :  { %v421_v48 = vpop.f32.mrf.mxu0 }
 0x250   :  { %301 = vst [vmem:[%s626_s7] sm:$0xff] %v298_v47 }

</bundles_post_ra>
